<compile_context>
chip_gen: v6e
topology: v6e:2x2x1
jax: 0.10.0
libtpu: 0.0.40
codegen_flags: <defaults>
</compile_context>

<pallas_src>
import functools

import jax
import jax.numpy as jnp
from jax.experimental import pallas as pl
from jax.experimental.pallas import tpu as pltpu


def _dice_kernel(logits_ref, true_ref, dice_ref, inter_acc, union_acc,
                 *, smooth, S, tile_cols, mask_cols):
    """Grid step (i, j): accumulate row sums over column block j of row block i."""
    j = pl.program_id(1)

    @pl.when(j == 0)
    def _():
        inter_acc[...] = jnp.zeros_like(inter_acc)
        union_acc[...] = jnp.zeros_like(union_acc)

    x = logits_ref[...].astype(jnp.float32)     # (tile_rows, tile_cols)
    t = true_ref[...].astype(jnp.float32)       # widen mask in-kernel (no XLA cast)
    if mask_cols:
        # Ragged last column block: neutralize out-of-range lanes.
        col = j * tile_cols + jax.lax.broadcasted_iota(jnp.int32, x.shape, 1)
        valid = col < S
        x = jnp.where(valid, x, -1e30)          # sigmoid(-1e30) -> 0
        t = jnp.where(valid, t, 0.0)

    p = jax.nn.sigmoid(x)
    inter_acc[...] += jnp.sum(p * t, axis=-1, keepdims=True)
    union_acc[...] += jnp.sum(p + t, axis=-1, keepdims=True)   # fused reduction

    @pl.when(j == pl.num_programs(1) - 1)
    def _():
        dice_ref[...] = ((2.0 * inter_acc[...] + smooth)
                         / (union_acc[...] + smooth))


def _round_up(x, m):
    return ((x + m - 1) // m) * m


def _choose_tiles(R, S):
    """Pick (tile_rows, tile_cols) targeting ~4 MiB f32 input blocks."""
    target_block_bytes = 4 * 1024 * 1024
    row_bytes = S * 4
    if row_bytes <= (1 << 20):
        # Full-width rows; single column step.
        tile_cols = S
        tile_rows = max(8, (target_block_bytes // max(row_bytes, 1)) // 8 * 8)
        # v7x megacore: keep at least 2 row blocks when R allows.
        half_rows = _round_up(max((R + 1) // 2, 8), 8)
        tile_rows = min(tile_rows, half_rows, _round_up(R, 8))
    else:
        # Large images: split the lane axis, accumulate per row in VMEM.
        tile_rows = 64 if R >= 64 else _round_up(R, 8)
        tile_cols = max(128, (target_block_bytes // (tile_rows * 4)) // 128 * 128)
        tile_cols = min(tile_cols, _round_up(S, 128))
    return tile_rows, tile_cols


def dice_loss_pallas(logits, true, smooth=1.0):
    """Equivalent of DiceLoss(smooth).forward(logits, true) for NCHW inputs."""
    N, C, H, W = logits.shape
    assert true.shape == logits.shape

    R = N * C
    S = H * W
    x2 = logits.reshape(R, S)
    t2 = true.reshape(R, S)                     # stored dtype; widened in-kernel

    tile_rows, tile_cols = _choose_tiles(R, S)
    row_blocks = (R + tile_rows - 1) // tile_rows
    col_blocks = (S + tile_cols - 1) // tile_cols
    mask_cols = (tile_cols < S) and (S % tile_cols != 0)

    # VMEM budget derived from the actual blocks:
    #   2 inputs x 2 pipeline buffers x block  +  output/scratch  +  slack.
    in_block_bytes = tile_rows * tile_cols * 4
    vmem_bytes = 2 * 2 * in_block_bytes + 8 * tile_rows * 4 + (4 << 20)
    vmem_bytes = min(max(vmem_bytes, 16 << 20), 40 << 20)

    kernel = functools.partial(
        _dice_kernel, smooth=float(smooth), S=S,
        tile_cols=tile_cols, mask_cols=mask_cols)

    dice_rows = pl.pallas_call(
        kernel,
        out_shape=jax.ShapeDtypeStruct((R, 1), jnp.float32),
        grid_spec=pltpu.PrefetchScalarGridSpec(
            num_scalar_prefetch=0,
            grid=(row_blocks, col_blocks),
            in_specs=[
                pl.BlockSpec((tile_rows, tile_cols), lambda i, j: (i, j)),
                pl.BlockSpec((tile_rows, tile_cols), lambda i, j: (i, j)),
            ],
            out_specs=pl.BlockSpec((tile_rows, 1), lambda i, j: (i, 0)),
            scratch_shapes=[
                pltpu.VMEM((tile_rows, 1), jnp.float32),   # intersection acc
                pltpu.VMEM((tile_rows, 1), jnp.float32),   # union acc
            ],
        ),
        compiler_params=pltpu.CompilerParams(
            dimension_semantics=("parallel", "arbitrary"),
            vmem_limit_bytes=vmem_bytes,
        ),
    )(x2, t2)

    # Tiny final mean over the N*C per-row dice values stays in plain JAX so
    # the row grid axis remains embarrassingly parallel across TensorCores.
    return 1.0 - jnp.mean(dice_rows[:, 0])


def dice_loss_ref(logits, true, smooth=1.0):
    """Pure-JAX reference mirroring the PyTorch module."""
    p = jax.nn.sigmoid(logits.astype(jnp.float32))
    t = true.astype(jnp.float32)
    inter = (p * t).sum(axis=(2, 3))
    union = p.sum(axis=(2, 3)) + t.sum(axis=(2, 3))
    dice = (2.0 * inter + smooth) / (union + smooth)
    return 1.0 - dice.mean()


if __name__ == "__main__":
    key = jax.random.PRNGKey(0)
    k1, k2 = jax.random.split(key)

    N, C, H, W = 2, 4, 16, 16
    logits = jax.random.normal(k1, (N, C, H, W), dtype=jnp.float32)
    true = (jax.random.uniform(k2, (N, C, H, W)) > 0.5).astype(jnp.float32)

    loss = jax.block_until_ready(dice_loss_pallas(logits, true, smooth=1.0))
    ref = jax.block_until_ready(dice_loss_ref(logits, true, smooth=1.0))

    assert jnp.allclose(loss, ref, atol=1e-5, rtol=1e-5), (loss, ref)
    print("KERNEL_OK")
</pallas_src>

<mosaic_0001>
module attributes {stable_mosaic.version = 11 : i64} {
  func.func @_dice_kernel(%arg0: i32, %arg1: i32, %arg2: memref<8x256xf32, #tpu.memory_space<vmem>>, %arg3: memref<8x256xf32, #tpu.memory_space<vmem>>, %arg4: memref<8x1xf32, #tpu.memory_space<vmem>>, %arg5: memref<8x1xf32, #tpu.memory_space<vmem>>, %arg6: memref<8x1xf32, #tpu.memory_space<vmem>>) attributes {dimension_semantics = [#tpu.dimension_semantics<parallel>, #tpu.dimension_semantics<arbitrary>], iteration_bounds = array<i64: 1, 1>, scalar_prefetch = 0 : i64, scratch_operands = 2 : i64, tpu.core_type = #tpu.core_type<tc>, window_params = [{transform_indices = @transform_0, window_bounds = array<i64: 8, 256>}, {transform_indices = @transform_1, window_bounds = array<i64: 8, 256>}, {transform_indices = @transform_2, window_bounds = array<i64: 8, 1>}]} {
    %c0_i32 = arith.constant 0 : i32
    %0 = arith.cmpi eq, %arg1, %c0_i32 : i32
    %1 = arith.extui %0 : i1 to i32
    %c0_i32_0 = arith.constant 0 : i32
    %2 = arith.cmpi ne, %1, %c0_i32_0 : i32
    scf.if %2 {
      %cst_16 = arith.constant 0.000000e+00 : f32
      %25 = vector.broadcast %cst_16 : f32 to vector<8x1xf32>
      %c0_17 = arith.constant 0 : index
      %c0_18 = arith.constant 0 : index
      %26 = vector.load %arg5[%c0_17, %c0_18] : memref<8x1xf32, #tpu.memory_space<vmem>>, vector<8x1xf32>
      tpu.vector_store %arg5[%c0_17, %c0_18], %25 {strides = array<i32>} : memref<8x1xf32, #tpu.memory_space<vmem>>, vector<8x1xf32>,
      %cst_19 = arith.constant 0.000000e+00 : f32
      %27 = vector.broadcast %cst_19 : f32 to vector<8x1xf32>
      %c0_20 = arith.constant 0 : index
      %c0_21 = arith.constant 0 : index
      %28 = vector.load %arg6[%c0_20, %c0_21] : memref<8x1xf32, #tpu.memory_space<vmem>>, vector<8x1xf32>
      tpu.vector_store %arg6[%c0_20, %c0_21], %27 {strides = array<i32>} : memref<8x1xf32, #tpu.memory_space<vmem>>, vector<8x1xf32>,
    } else {
    }
    %c0 = arith.constant 0 : index
    %c0_1 = arith.constant 0 : index
    %3 = vector.load %arg2[%c0, %c0_1] : memref<8x256xf32, #tpu.memory_space<vmem>>, vector<8x256xf32>
    %c0_2 = arith.constant 0 : index
    %c0_3 = arith.constant 0 : index
    %4 = vector.load %arg3[%c0_2, %c0_3] : memref<8x256xf32, #tpu.memory_space<vmem>>, vector<8x256xf32>
    %5 = arith.negf %3 : vector<8x256xf32>
    %6 = math.exp %5 : vector<8x256xf32>
    %cst = arith.constant 1.000000e+00 : f32
    %7 = vector.broadcast %cst : f32 to vector<8x256xf32>
    %8 = arith.addf %7, %6 : vector<8x256xf32>
    %9 = arith.divf %7, %8 : vector<8x256xf32>
    %c0_4 = arith.constant 0 : index
    %c0_5 = arith.constant 0 : index
    %10 = vector.load %arg5[%c0_4, %c0_5] : memref<8x1xf32, #tpu.memory_space<vmem>>, vector<8x1xf32>
    %11 = arith.mulf %9, %4 : vector<8x256xf32>
    %cst_6 = arith.constant dense<0.000000e+00> : vector<8xf32>
    %12 = vector.multi_reduction <add>, %11, %cst_6 [1] : vector<8x256xf32> to vector<8xf32>
    %13 = vector.shape_cast %12 : vector<8xf32> to vector<8x1xf32>
    %14 = arith.addf %10, %13 : vector<8x1xf32>
    %c0_7 = arith.constant 0 : index
    %c0_8 = arith.constant 0 : index
    %15 = vector.load %arg5[%c0_7, %c0_8] : memref<8x1xf32, #tpu.memory_space<vmem>>, vector<8x1xf32>
    tpu.vector_store %arg5[%c0_7, %c0_8], %14 {strides = array<i32>} : memref<8x1xf32, #tpu.memory_space<vmem>>, vector<8x1xf32>,
    %c0_9 = arith.constant 0 : index
    %c0_10 = arith.constant 0 : index
    %16 = vector.load %arg6[%c0_9, %c0_10] : memref<8x1xf32, #tpu.memory_space<vmem>>, vector<8x1xf32>
    %17 = arith.addf %9, %4 : vector<8x256xf32>
    %cst_11 = arith.constant dense<0.000000e+00> : vector<8xf32>
    %18 = vector.multi_reduction <add>, %17, %cst_11 [1] : vector<8x256xf32> to vector<8xf32>
    %19 = vector.shape_cast %18 : vector<8xf32> to vector<8x1xf32>
    %20 = arith.addf %16, %19 : vector<8x1xf32>
    %c0_12 = arith.constant 0 : index
    %c0_13 = arith.constant 0 : index
    %21 = vector.load %arg6[%c0_12, %c0_13] : memref<8x1xf32, #tpu.memory_space<vmem>>, vector<8x1xf32>
    tpu.vector_store %arg6[%c0_12, %c0_13], %20 {strides = array<i32>} : memref<8x1xf32, #tpu.memory_space<vmem>>, vector<8x1xf32>,
    %c0_i32_14 = arith.constant 0 : i32
    %22 = arith.cmpi eq, %arg1, %c0_i32_14 : i32
    %23 = arith.extui %22 : i1 to i32
    %c0_i32_15 = arith.constant 0 : i32
    %24 = arith.cmpi ne, %23, %c0_i32_15 : i32
    scf.if %24 {
      %c0_16 = arith.constant 0 : index
      %c0_17 = arith.constant 0 : index
      %25 = vector.load %arg5[%c0_16, %c0_17] : memref<8x1xf32, #tpu.memory_space<vmem>>, vector<8x1xf32>
      %cst_18 = arith.constant 2.000000e+00 : f32
      %26 = vector.broadcast %cst_18 : f32 to vector<8x1xf32>
      %27 = arith.mulf %26, %25 : vector<8x1xf32>
      %cst_19 = arith.constant 1.000000e+00 : f32
      %28 = vector.broadcast %cst_19 : f32 to vector<8x1xf32>
      %29 = arith.addf %27, %28 : vector<8x1xf32>
      %c0_20 = arith.constant 0 : index
      %c0_21 = arith.constant 0 : index
      %30 = vector.load %arg6[%c0_20, %c0_21] : memref<8x1xf32, #tpu.memory_space<vmem>>, vector<8x1xf32>
      %cst_22 = arith.constant 1.000000e+00 : f32
      %31 = vector.broadcast %cst_22 : f32 to vector<8x1xf32>
      %32 = arith.addf %30, %31 : vector<8x1xf32>
      %33 = arith.divf %29, %32 : vector<8x1xf32>
      %c0_23 = arith.constant 0 : index
      %c0_24 = arith.constant 0 : index
      %34 = vector.load %arg4[%c0_23, %c0_24] : memref<8x1xf32, #tpu.memory_space<vmem>>, vector<8x1xf32>
      tpu.vector_store %arg4[%c0_23, %c0_24], %33 {strides = array<i32>} : memref<8x1xf32, #tpu.memory_space<vmem>>, vector<8x1xf32>,
    } else {
    }
    return
  }
  func.func @transform_0(%arg0: i32, %arg1: i32) -> (i32, i32) {
    %c0_i32 = arith.constant 0 : i32
    return %arg0, %arg1 : i32, i32
  }
  func.func @transform_1(%arg0: i32, %arg1: i32) -> (i32, i32) {
    %c0_i32 = arith.constant 0 : i32
    return %arg0, %arg1 : i32, i32
  }
  func.func @transform_2(%arg0: i32, %arg1: i32) -> (i32, i32) {
    %c0_i32 = arith.constant 0 : i32
    %c0_i32_0 = arith.constant 0 : i32
    return %arg0, %c0_i32 : i32, i32
  }
}

</mosaic_0001>

<bundles_post_ra>
// kernel: tpu_custom_call.1
= control target key start
LH: loop header
LB: loop body
LE: loop exit
PB: predicated region body
PF: predicated region fallthrough
CT: control target
= control target key end

     0   :  { %7 = vsyncpa [#allocation5], 0  ;;  %s183_s0 = inlined_call_operand.hbm [shape: f32[8,256], index: 0, kind: input, shape index: {}]   ;;  %s184_s1 = inlined_call_operand.hbm [shape: f32[8,256], index: 1, kind: input, shape index: {}]   ;;  %s185_s2 = inlined_call_operand.vmem [shape: f32[8,1], index: 2, kind: output, shape index: {}]  }
   0x1   :  { %8 = vsyncpa [#allocation7], 0  ;;  %s151_s9 = smov [#allocation4]   ;;  %s152_s11 = smov [#allocation6]  }
   0x2   :  { %s15_s10 = sshll.u32 %s151_s9, 4  ;;  %s25_s12 = sshll.u32 %s152_s11, 4  ;;  %s16_s10 = int_to_ptr.vmem [resolvable:$true] %s15_s10  ;;  %s26_s12 = int_to_ptr.vmem [resolvable:$true] %s25_s12 }
   0x3   :  { %s115_s13 = scalar_lea.vmem %s16_s10, 256  ;;  %p120_p1 = scmp.lt.s32.totalorder %s16_s10, %s16_s10 }
   0x4   :  { %p116_p0 = scmp.ne.s32.totalorder %s16_s10, %s115_s13  ;;  %p121_p2 = scmp.lt.s32.totalorder %s115_s13, %s115_s13 }
   0x6   :  { %p122_p3 = por %p121_p2, %p120_p1 }
   0x8   :  { %p123_p4 = pnand %p122_p3, %p116_p0 }
   0xa   :  { %126 = shalt.err (!%p123_p4)
}
   0xb   :  { %18 = dma.hbm_to_vmem [thread:$0]  %s183_s0, 256, %s16_s10, [#allocation5]  }
   0xc   :  { %s135_s16 = scalar_lea.vmem %s26_s12, 256  ;;  %p140_p6 = scmp.lt.s32.totalorder %s26_s12, %s26_s12 }
   0xd   :  { %p136_p5 = scmp.ne.s32.totalorder %s26_s12, %s135_s16  ;;  %p141_p7 = scmp.lt.s32.totalorder %s135_s16, %s135_s16 }
   0xf   :  { %p142_p8 = por %p141_p7, %p140_p6 }
  0x11   :  { %p143_p9 = pnand %p142_p8, %p136_p5 }
  0x13   :  { %146 = shalt.err (!%p143_p9)
}
  0x14   :  { %28 = dma.hbm_to_vmem [thread:$0]  %s184_s1, 256, %s26_s12, [#allocation7]  }
  0x15   :  { %147 = dma.done.wait [#allocation5], 256  }
  0x16   :  { %148 = vsyncadd [#allocation5], 4294967040 }
  0x17   :  { %149 = dma.done.wait [#allocation7], 256  }
  0x18   :  { %150 = vsyncadd [#allocation7], 4294967040  ;;  %vm39_vm0 = vcmask 7168   ;;  %v153_v0 = vmov 0.0   ;;  %v42_v1 = vld [vmem:[#allocation4] sm:$0xff]  ;;  %v43_v2 = vld [vmem:[#allocation4 + $0x8] sm:$0xff] }
  0x19   :  { %41 = vst.msk [vmem:[#allocation3] sm:$0xff] %vm39_vm0, %v153_v0  ;;  %40 = vst.msk [vmem:[#allocation2] sm:$0xff] %vm39_vm0, %v153_v0  ;;  %v92_v3 = vmul.f32 -1.442695, %v42_v1  ;;  %v93_v4 = vmul.f32 -1.442695, %v43_v2 }
  0x1a   :  { %v44_v9 = vld [vmem:[#allocation6] sm:$0xff]  ;;  %v45_v10 = vld [vmem:[#allocation6 + $0x8] sm:$0xff] }
  0x1b   :  { %97 = vpow2.f32 %v92_v3 }
  0x1c   :  { %99 = vpow2.f32 %v93_v4 }
  0x20   :  { %v67_v19 = vld [vmem:[#allocation3] sm:$0xff]  ;;  %v58_v22 = vld [vmem:[#allocation2] sm:$0xff] }
  0x28   :  { %v98_v5 = vpop.eup %97 }
  0x29   :  { %v100_v6 = vpop.eup %99  ;;  %v52_v7 = vadd.f32 1.0, %v98_v5 }
  0x2a   :  { %v53_v8 = vadd.f32 1.0, %v100_v6 }
  0x2b   :  { %101 = vrcp.f32 %v52_v7 }
  0x2c   :  { %103 = vrcp.f32 %v53_v8 }
  0x38   :  { %v102_v11 = vpop.eup %101 }
  0x39   :  { %v104_v12 = vpop.eup %103  ;;  %v68_v13 = vadd.f32 %v102_v11, %v44_v9  ;;  %v59_v15 = vmul.f32 %v102_v11, %v44_v9 }
  0x3a   :  { %v69_v14 = vadd.f32 %v104_v12, %v45_v10  ;;  %v60_v16 = vmul.f32 %v104_v12, %v45_v10 }
  0x3c   :  { %v70_v17 = vadd.f32 %v69_v14, %v68_v13  ;;  %v61_v18 = vadd.f32 %v60_v16, %v59_v15 }
  0x3e   :  { %71 = vadd.xlane.f32.xlu0 %v70_v17 }
  0x42   :  { %62 = vadd.xlane.f32.xlu0 %v61_v18 }
  0xc7   :  { %v72_v20 = vpop.xlane.xlu0 %71 }
  0xc8   :  { %v73_v21 = vadd.f32 %v72_v20, %v67_v19 }
  0xca   :  { %74 = vst.msk [vmem:[#allocation3] sm:$0xff] %vm39_vm0, %v73_v21 }
  0xcb   :  { %v63_v23 = vpop.xlane.xlu0 %62 }
  0xcc   :  { %v64_v24 = vadd.f32 %v63_v23, %v58_v22 }
  0xce   :  { %66 = vst.msk [vmem:[#allocation2] sm:$0xff] %vm39_vm0, %v64_v24 }
  0xd1   :  { %v81_v25 = vld [vmem:[#allocation3] sm:$0xff] }
  0xd2   :  { %v82_v26 = vadd.f32 1.0, %v81_v25 }
  0xd4   :  { %105 = vrcp.f32 %v82_v26 }
  0xd5   :  { %v78_v27 = vld [vmem:[#allocation2] sm:$0xff] }
  0xd6   :  { %v79_v28 = vmul.f32 2.0, %v78_v27 }
  0xd8   :  { %v80_v29 = vadd.f32 1.0, %v79_v28 }
  0xe1   :  { %v106_v30 = vpop.eup %105 }
  0xe2   :  { %v84_v31 = vmul.f32 %v106_v30, %v80_v29 }
  0xe4   :  { %85 = vst.msk [vmem:[%s185_s2] sm:$0xff] %vm39_vm0, %v84_v31 }
  0xe5   :  { %90 = vsyncpa [#allocation5], 1 }
  0xe6   :  { %91 = vsyncpa [#allocation7], 1 }

</bundles_post_ra>
